<compile_context>
chip_gen: v7x
topology: tpu7x:2x2x1
jax: 0.10.0
libtpu: 0.0.40
codegen_flags: <defaults>
</compile_context>

<pallas_src>
import functools

import jax
import jax.numpy as jnp
from jax.experimental import pallas as pl
from jax.experimental.pallas import tpu as pltpu


# ----------------------------------------------------------------------------
# Kernel: apply precomputed channel + spatial gates to U (pure DMA + VPU work)
# ----------------------------------------------------------------------------
def _apply_gates_kernel(u_ref, gc_ref, gs_ref, o_ref):
    # gc: (RB, 1)   per-row (i.e. per (n, c)) channel gate, f32
    # gs: (1, HWB)  spatial gate, f32
    gate = gc_ref[...] + gs_ref[...]                       # (RB, HWB) via broadcast
    o_ref[...] = (u_ref[...] * gate).astype(o_ref.dtype)   # f32 math, cast only at the store


# ----------------------------------------------------------------------------
# Block-size heuristic for the lane-dense (rows, HW) layout.
#   - row block: multiple of 8 (or == rows)  -> sublane legal
#   - hw  block: multiple of 128 (or == HW)  -> lane legal
#   - prefers full-HW blocks and the largest row block within the VMEM budget,
#     falls back to splitting HW in multiples of 128 for very large feature maps.
# ----------------------------------------------------------------------------
def _pick_block(rows, hw, itemsize, budget_bytes=4 << 20):
    row_cands = sorted({d for d in range(8, rows + 1, 8) if rows % d == 0} | {rows},
                       reverse=True)
    hw_cands = {hw}
    if hw % 128 == 0:
        hw_cands |= {d for d in range(128, hw, 128) if hw % d == 0}
    hw_cands = sorted(hw_cands, reverse=True)

    for hwb in hw_cands:                 # full HW first (lane-dense), then split
        for rb in row_cands:             # largest row block that fits the budget
            if rb * hwb * itemsize <= budget_bytes:
                return rb, hwb
    # Nothing fits the budget (tiny budget / awkward shape): smallest legal block.
    return min(row_cands), min(hw_cands)


# ----------------------------------------------------------------------------
# Module wrapper
# ----------------------------------------------------------------------------
def init_scse_params(key, in_channels, h):
    """Deterministic synthetic params, PyTorch-native layout: W (out, in), b (out,)."""
    ks = jax.random.split(key, 10)

    def lin(kw, kb, din, dout, scale=0.3):
        w = scale * jax.random.normal(kw, (dout, din), jnp.float32)
        b = scale * jax.random.normal(kb, (dout,), jnp.float32)
        return w, b

    w1, b1 = lin(ks[0], ks[1], 2, 30)
    w2, b2 = lin(ks[2], ks[3], 30, 30)
    w3, b3 = lin(ks[4], ks[5], 30, 30)
    wc, bc = lin(ks[6], ks[7], 30, in_channels)
    ws, bs = lin(ks[8], ks[9], 30, h * h)
    return (w1, b1, w2, b2, w3, b3, wc, bc, ws, bs)


def scse_forward(U, pre, params, mode):
    N, C, H, W = U.shape
    assert H == W, "spatial attention reshape requires H == W (as in the PyTorch module)"
    HW = H * W
    rows = N * C
    use_c = 'cSE' in mode
    use_s = 'sSE' in mode

    (w1, b1, w2, b2, w3, b3, wc, bc, ws, bs) = params

    # --- tiny preference MLP + heads + sigmoids: O(C + HW) work, precomputed once ---------
    v = jnp.maximum(pre.reshape(1, 2).astype(jnp.float32) @ w1.T + b1, 0.0)
    v = jnp.maximum(v @ w2.T + b2, 0.0)
    v = v @ w3.T + b3                                            # (1, 30)

    if use_c:
        g_c = jax.nn.sigmoid(v @ wc.T + bc).reshape(C, 1)        # (C, 1)
    else:
        g_c = jnp.zeros((C, 1), jnp.float32)
    if use_s:
        g_s = jax.nn.sigmoid(v @ ws.T + bs).reshape(1, HW)       # (1, HW), row-major (H, W)
    else:
        g_s = jnp.zeros((1, HW), jnp.float32)
    # Empty mode -> both gates zero -> output zeros (matches previous kernel; the PyTorch
    # module would raise in that case).

    gc_rows = jnp.tile(g_c, (N, 1))                              # (N*C, 1): row n*C+c -> g_c[c]

    # --- memory-bound gating pass over U ---------------------------------------------------
    u2 = U.reshape(rows, HW)                                     # sublane/lane-dense 2-D view

    RB, HWB = _pick_block(rows, HW, U.dtype.itemsize)
    grid = (rows // RB, HW // HWB)

    out2 = pl.pallas_call(
        _apply_gates_kernel,
        out_shape=jax.ShapeDtypeStruct((rows, HW), U.dtype),
        grid_spec=pltpu.PrefetchScalarGridSpec(
            num_scalar_prefetch=0,
            grid=grid,
            in_specs=[
                pl.BlockSpec((RB, HWB), lambda i, j: (i, j)),    # U block
                pl.BlockSpec((RB, 1), lambda i, j: (i, 0)),      # channel gate rows
                pl.BlockSpec((1, HWB), lambda i, j: (0, j)),     # spatial gate
            ],
            out_specs=pl.BlockSpec((RB, HWB), lambda i, j: (i, j)),
        ),
        compiler_params=pltpu.CompilerParams(
            dimension_semantics=("parallel", "parallel"),
            vmem_limit_bytes=48 * 1024 * 1024),
    )(u2, gc_rows, g_s)

    return out2.reshape(N, C, H, W)


# plain-JAX reference for verification (mirrors the PyTorch forward)
def scse_ref(U, pre, params, mode):
    (w1, b1, w2, b2, w3, b3, wc, bc, ws, bs) = params
    v = jnp.maximum(pre.reshape(1, 2) @ w1.T + b1, 0.0)
    v = jnp.maximum(v @ w2.T + b2, 0.0)
    v = v @ w3.T + b3
    out = jnp.zeros_like(U)
    if 'cSE' in mode:
        z = jax.nn.sigmoid((v @ wc.T + bc).reshape(-1, 1, 1))
        out = out + U * z
    if 'sSE' in mode:
        q = jax.nn.sigmoid((v @ ws.T + bs).reshape(U.shape[-1], U.shape[-2]))
        out = out + U * q
    return out


if __name__ == "__main__":
    key = jax.random.PRNGKey(0)
    k_u, k_p = jax.random.split(key)

    N, C, H, W = 2, 4, 16, 16
    mode = ['sSE', 'cSE']

    U = jax.random.normal(k_u, (N, C, H, W), jnp.float32)
    pre = jnp.array([0.3, 0.7], jnp.float32)            # preference vector
    params = init_scse_params(k_p, C, H)

    fwd = jax.jit(functools.partial(scse_forward, mode=mode))
    out = fwd(U, pre, params)
    out = jax.block_until_ready(out)

    ref = scse_ref(U, pre, params, mode)
    assert out.shape == U.shape and out.dtype == U.dtype
    assert jnp.allclose(out, ref, atol=1e-4, rtol=1e-4), "mismatch vs reference"

    print("KERNEL_OK")
</pallas_src>

<mosaic_0001>
module attributes {stable_mosaic.version = 11 : i64} {
  func.func @_apply_gates_kernel(%arg0: i32, %arg1: i32, %arg2: memref<8x256xf32, #tpu.memory_space<vmem>>, %arg3: memref<8x1xf32, #tpu.memory_space<vmem>>, %arg4: memref<1x256xf32, #tpu.memory_space<vmem>>, %arg5: memref<8x256xf32, #tpu.memory_space<vmem>>) attributes {dimension_semantics = [#tpu.dimension_semantics<parallel>, #tpu.dimension_semantics<parallel>], iteration_bounds = array<i64: 1, 1>, scalar_prefetch = 0 : i64, scratch_operands = 0 : i64, tpu.core_type = #tpu.core_type<tc>, window_params = [{transform_indices = @transform_0, window_bounds = array<i64: 8, 256>}, {transform_indices = @transform_1, window_bounds = array<i64: 8, 1>}, {transform_indices = @transform_2, window_bounds = array<i64: 1, 256>}, {transform_indices = @transform_3, window_bounds = array<i64: 8, 256>}]} {
    %c0 = arith.constant 0 : index
    %c0_0 = arith.constant 0 : index
    %0 = vector.load %arg3[%c0, %c0_0] : memref<8x1xf32, #tpu.memory_space<vmem>>, vector<8x1xf32>
    %c0_1 = arith.constant 0 : index
    %c0_2 = arith.constant 0 : index
    %1 = vector.load %arg4[%c0_1, %c0_2] : memref<1x256xf32, #tpu.memory_space<vmem>>, vector<1x256xf32>
    %2 = vector.broadcast %0 : vector<8x1xf32> to vector<8x256xf32>
    %3 = vector.broadcast %1 : vector<1x256xf32> to vector<8x256xf32>
    %4 = arith.addf %2, %3 : vector<8x256xf32>
    %c0_3 = arith.constant 0 : index
    %c0_4 = arith.constant 0 : index
    %5 = vector.load %arg2[%c0_3, %c0_4] : memref<8x256xf32, #tpu.memory_space<vmem>>, vector<8x256xf32>
    %6 = arith.mulf %5, %4 : vector<8x256xf32>
    %c0_5 = arith.constant 0 : index
    %c0_6 = arith.constant 0 : index
    %7 = vector.load %arg5[%c0_5, %c0_6] : memref<8x256xf32, #tpu.memory_space<vmem>>, vector<8x256xf32>
    tpu.vector_store %arg5[%c0_5, %c0_6], %6 {strides = array<i32>} : memref<8x256xf32, #tpu.memory_space<vmem>>, vector<8x256xf32>,
    return
  }
  func.func @transform_0(%arg0: i32, %arg1: i32) -> (i32, i32) {
    %c0_i32 = arith.constant 0 : i32
    return %arg0, %arg1 : i32, i32
  }
  func.func @transform_1(%arg0: i32, %arg1: i32) -> (i32, i32) {
    %c0_i32 = arith.constant 0 : i32
    %c0_i32_0 = arith.constant 0 : i32
    return %arg0, %c0_i32 : i32, i32
  }
  func.func @transform_2(%arg0: i32, %arg1: i32) -> (i32, i32) {
    %c0_i32 = arith.constant 0 : i32
    %c0_i32_0 = arith.constant 0 : i32
    return %c0_i32, %arg1 : i32, i32
  }
  func.func @transform_3(%arg0: i32, %arg1: i32) -> (i32, i32) {
    %c0_i32 = arith.constant 0 : i32
    return %arg0, %arg1 : i32, i32
  }
}

</mosaic_0001>

<bundles_post_ra>
// kernel: scse_forward.1
= control target key start
LH: loop header
LB: loop body
LE: loop exit
PB: predicated region body
PF: predicated region fallthrough
CT: control target
= control target key end

     0   :  { %v46_v0 = vmov 0   ;;  %v22_v2 = vlaneseq  ;;  %s85_s1 = inlined_call_operand.vmem [shape: f32[8,1], index: 1, kind: input, shape index: {}]   ;;  %s86_s2 = inlined_call_operand.vmem [shape: f32[1,256], index: 2, kind: input, shape index: {}]   ;;  %s87_s0 = inlined_call_operand.vmem [shape: f32[8,256], index: 0, kind: input, shape index: {}]   ;;  %s88_s3 = inlined_call_operand.vmem [shape: f32[8,256], index: 3, kind: output, shape index: {}]  }
   0x1   :  { %45 = vset.pattern.permute.xlu0 %v46_v0  ;;  %v14_v1 = vld [vmem:[%s85_s1] sm:$0xff]  ;;  %v35_v11 = vld [vmem:[%s87_s0 + $0x8] sm:$0xff] }
   0x2   :  { %18 = vperm.xlu0 %45, %v14_v1   ;;  %v23_v3 = vshrl.u32 %v22_v2, 7  ;;  %v15_v6 = vld [vmem:[%s86_s2] sm:$0x3] }
   0x3   :  { %v34_v10 = vld [vmem:[%s87_s0] sm:$0xff] }
   0x4   :  { %v24_v4 = vsub.s32 0, %v23_v3  ;;  %v28_v5 = vsub.s32 1, %v23_v3 }
   0x6   :  { %v25_v7 = vrot.slane %v15_v6, %v24_v4  ;;  %v29_v8 = vrot.slane %v15_v6, %v28_v5 }
  0x81   :  { %v19_v9 = vpop.permute.xlu0 %18 }
  0x82   :  { %v32_v12 = vadd.f32 %v25_v7, %v19_v9  ;;  %v33_v13 = vadd.f32 %v29_v8, %v19_v9 }
  0x84   :  { %v36_v14 = vmul.f32 %v34_v10, %v32_v12  ;;  %v37_v15 = vmul.f32 %v35_v11, %v33_v13 }
  0x86   :  { %38 = vst [vmem:[%s88_s3] sm:$0xff] %v36_v14  ;;  %39 = vst [vmem:[%s88_s3 + $0x8] sm:$0xff] %v37_v15 }

</bundles_post_ra>
